<compile_context>
chip_gen: v7x
topology: tpu7x:2x2x1
jax: 0.10.0
libtpu: 0.0.40
codegen_flags: <defaults>
</compile_context>

<pallas_src>
import functools

import jax
import jax.numpy as jnp
from jax import lax
from jax.experimental import pallas as pl
from jax.experimental.pallas import tpu as pltpu


# ---------------------------------------------------------------------------
# Enums / output container mirroring the PyTorch module
# ---------------------------------------------------------------------------
class PoolingType:
    LAST = 0
    CLS = 1


class EmbeddingPoolerOutput:
    def __init__(self, embeddings):
        self.embeddings = embeddings


def _round_up(x: int, m: int) -> int:
    return ((x + m - 1) // m) * m


# ---------------------------------------------------------------------------
# Pallas kernel: one grid step = one block of `block_rows` pooled rows.
# Cross-step double-buffered row gather (manual DMAs), then one dense store.
# ---------------------------------------------------------------------------
def _pool_block_kernel(idx_ref, hs_hbm, out_ref, rows_vmem, sems, *,
                       normalize: bool, block_rows: int):
    blk = pl.program_id(0)
    num_blocks = pl.num_programs(0)
    slot = blk % 2
    nxt_slot = 1 - slot

    def issue_gather(block_idx, to_slot):
        # Static unroll keeps the issue loop visible to the LLO scheduler and
        # keeps all SMEM index reads ahead of any .wait() (sst->sld forwarding).
        for r in range(block_rows):  # block_rows is a small Python int
            tok = idx_ref[block_idx * block_rows + r]
            pltpu.make_async_copy(
                hs_hbm.at[pl.ds(tok, 1), :],
                rows_vmem.at[to_slot, pl.ds(r, 1), :],
                sems.at[to_slot, r],
            ).start()

    # Prime the pipeline: the first grid step issues its own block's gather.
    @pl.when(blk == 0)
    def _():
        issue_gather(0, 0)

    # Prefetch the NEXT block's rows into the other slot BEFORE waiting on the
    # current block, so its HBM gather overlaps this block's compute/writeback.
    @pl.when(blk + 1 < num_blocks)
    def _():
        issue_gather(blk + 1, nxt_slot)

    # Wait for the current block's gather (issued on the previous step, or by
    # the prime branch for block 0).
    for r in range(block_rows):
        pltpu.make_async_copy(
            hs_hbm.at[pl.ds(0, 1), :],
            rows_vmem.at[slot, pl.ds(r, 1), :],
            sems.at[slot, r],
        ).wait()

    rows = rows_vmem[slot]
    if normalize:
        # torch.nn.functional.normalize(p=2, dim=1): x / max(||x||_2, eps).
        # rsqrt on the squared sum clamped at eps^2 is identical semantics,
        # keeps the transcendental on the EUP and avoids a per-element divide.
        rows_f32 = rows.astype(jnp.float32)
        sq_sum = jnp.sum(rows_f32 * rows_f32, axis=-1, keepdims=True)
        eps = jnp.float32(1e-12)
        inv_norm = lax.rsqrt(jnp.maximum(sq_sum, eps * eps))
        out_ref[...] = (rows_f32 * inv_norm).astype(out_ref.dtype)
    else:
        out_ref[...] = rows.astype(out_ref.dtype)


def _pooler_pallas(hidden_states, token_indices, *, normalize: bool,
                   block_rows: int | None = None):
    total_tokens, hidden = hidden_states.shape
    batch = token_indices.shape[0]
    dtype = hidden_states.dtype
    dtype_bytes = jnp.dtype(dtype).itemsize

    # Lane-dense layout: pad hidden to a multiple of 128. Zero columns leave
    # the L2 norm unchanged and are sliced off after the call. (Real embedding
    # models have hidden % 128 == 0, so this is usually a no-op.)
    hidden_pad = _round_up(hidden, 128)
    if hidden_pad != hidden:
        hidden_states = jnp.pad(hidden_states,
                                ((0, 0), (0, hidden_pad - hidden)))

    # Sublane-dense blocks: multiple of 8 rows, up to 128 rows per grid step so
    # many row DMAs stay in flight (the gather is per-DMA-latency bound).
    if block_rows is None:
        block_rows = min(128, _round_up(-(-batch // 4), 8))
    block_rows = max(8, _round_up(block_rows, 8))

    # VMEM budget: 2-slot gather buffer + double-buffered output block.
    def _vmem_needed(br):
        return 4 * br * hidden_pad * dtype_bytes

    while block_rows > 8 and _vmem_needed(block_rows) > 40 * 1024 * 1024:
        block_rows = _round_up(block_rows // 2, 8)
    vmem_limit = int(min(96 * 1024 * 1024,
                         max(16 * 1024 * 1024,
                             _vmem_needed(block_rows) + 4 * 1024 * 1024)))

    padded_batch = _round_up(batch, block_rows)
    num_blocks = padded_batch // block_rows

    idx = token_indices.astype(jnp.int32)
    pad = padded_batch - batch
    if pad:
        # Padded rows gather row 0 (always in bounds); sliced off after the call.
        idx = jnp.concatenate([idx, jnp.zeros((pad,), jnp.int32)], axis=0)

    # TODO(synk): for 16-bit dtypes, bitcast the HBM source and VMEM scratch to
    # uint32 ([total_tokens, hidden/2]) so each row DMA is 32-bit dense.

    kernel = functools.partial(_pool_block_kernel, normalize=normalize,
                               block_rows=block_rows)

    cost = pl.CostEstimate(
        flops=int(3 * batch * hidden_pad) if normalize else 0,
        transcendentals=int(batch) if normalize else 0,
        bytes_accessed=int(2 * batch * hidden_pad * dtype_bytes),
    )

    out = pl.pallas_call(
        kernel,
        out_shape=jax.ShapeDtypeStruct((padded_batch, hidden_pad), dtype),
        grid_spec=pltpu.PrefetchScalarGridSpec(
            num_scalar_prefetch=1,                      # token indices -> SMEM
            grid=(num_blocks,),
            in_specs=[
                # hidden_states stays in HBM; gather is done by manual DMAs.
                pl.BlockSpec(memory_space=pl.ANY),
            ],
            out_specs=pl.BlockSpec((block_rows, hidden_pad),
                                   lambda i, idx_ref: (i, 0)),
            scratch_shapes=[
                pltpu.VMEM((2, block_rows, hidden_pad), dtype),
                pltpu.SemaphoreType.DMA((2, block_rows)),
            ],
        ),
        compiler_params=pltpu.CompilerParams(
            # "arbitrary": the manual gather is double-buffered ACROSS grid
            # steps, so iterations must execute sequentially on one core.
            # TODO(synk): v7x 2-TC split would need a per-core self-contained
            # pipeline (or wrapper-level sharding) instead.
            dimension_semantics=("arbitrary",),
            vmem_limit_bytes=vmem_limit,
        ),
        cost_estimate=cost,
    )(idx, hidden_states)

    if pad or hidden_pad != hidden:
        out = out[:batch, :hidden]
    return out


# ---------------------------------------------------------------------------
# Pooler wrapper (mirrors the PyTorch module's forward)
# ---------------------------------------------------------------------------
class Pooler:
    def __init__(self, pooling_type: int, normalize: bool):
        self.pooling_type = pooling_type
        self.normalize = normalize

    def __call__(self, hidden_states, extend_seq_lens) -> EmbeddingPoolerOutput:
        total_tokens = hidden_states.shape[0]
        seq_lens = extend_seq_lens.astype(jnp.int32)
        csum = jnp.cumsum(seq_lens, axis=0)
        if self.pooling_type == PoolingType.LAST:
            token_indices = csum - 1
        elif self.pooling_type == PoolingType.CLS:
            token_indices = jnp.concatenate(
                [jnp.zeros((1,), jnp.int32), csum[:-1]], axis=0
            )
        else:
            raise ValueError(f"Invalid pooling type: {self.pooling_type}")

        # Negative-index wrap (matches torch semantics for zero-length sequences)
        # plus a clamp so the in-kernel DMA can never read out of bounds.
        token_indices = jnp.where(
            token_indices < 0, token_indices + total_tokens, token_indices
        )
        token_indices = jnp.clip(token_indices, 0, total_tokens - 1)

        pooled = _pooler_pallas(
            hidden_states, token_indices, normalize=self.normalize
        )
        return EmbeddingPoolerOutput(embeddings=pooled)


# ---------------------------------------------------------------------------
# Pure-JAX reference for validation
# ---------------------------------------------------------------------------
def _reference(hidden_states, seq_lens, pooling_type, normalize):
    csum = jnp.cumsum(seq_lens.astype(jnp.int32), axis=0)
    if pooling_type == PoolingType.LAST:
        idx = csum - 1
    else:
        idx = jnp.concatenate([jnp.zeros((1,), jnp.int32), csum[:-1]], axis=0)
    pooled = hidden_states[idx]
    if normalize:
        n = jnp.maximum(
            jnp.linalg.norm(pooled.astype(jnp.float32), axis=1, keepdims=True),
            1e-12,
        )
        pooled = (pooled.astype(jnp.float32) / n).astype(hidden_states.dtype)
    return pooled


if __name__ == "__main__":
    key = jax.random.PRNGKey(0)
    hidden = 32
    seq_lens = jnp.array([5, 8, 3, 8], dtype=jnp.int32)   # batch=4, total_tokens=24
    total_tokens = int(jnp.sum(seq_lens))

    hidden_states = jax.random.normal(key, (total_tokens, hidden),
                                      dtype=jnp.float32)

    ok = True
    for pooling_type in (PoolingType.LAST, PoolingType.CLS):
        for normalize in (True, False):
            pooler = Pooler(pooling_type, normalize)
            out = pooler(hidden_states, seq_lens).embeddings
            out = jax.block_until_ready(out)
            ref = _reference(hidden_states, seq_lens, pooling_type, normalize)
            if not jnp.allclose(out, ref, atol=1e-5, rtol=1e-5):
                ok = False

    if ok:
        print("KERNEL_OK")
    else:
        print("MISMATCH")
</pallas_src>

<mosaic_0001>
module attributes {stable_mosaic.version = 11 : i64} {
  func.func @_pool_block_kernel(%arg0: i32, %arg1: memref<8xi32, #tpu.memory_space<smem>>, %arg2: memref<24x128xf32, #tpu.memory_space<any>>, %arg3: memref<8x128xf32, #tpu.memory_space<vmem>>, %arg4: memref<2x8x128xf32, #tpu.memory_space<vmem>>, %arg5: memref<2x8x!tpu.dma_semaphore, #tpu.memory_space<semaphore_mem>>) attributes {dimension_semantics = [#tpu.dimension_semantics<arbitrary>], iteration_bounds = array<i64: 1>, scalar_prefetch = 1 : i64, scratch_operands = 2 : i64, tpu.core_type = #tpu.core_type<tc>, window_params = [{}, {transform_indices = @transform_1, window_bounds = array<i64: 8, 128>}]} {
    %c2_i32 = arith.constant 2 : i32
    %c0_i32 = arith.constant 0 : i32
    %0 = arith.cmpi eq, %c2_i32, %c0_i32 : i32
    %c1_i32 = arith.constant 1 : i32
    %1 = arith.select %0, %c1_i32, %c2_i32 : i32
    %2 = arith.remsi %arg0, %1 : i32
    %c0_i32_0 = arith.constant 0 : i32
    %3 = arith.cmpi ne, %2, %c0_i32_0 : i32
    %c0_i32_1 = arith.constant 0 : i32
    %4 = arith.cmpi slt, %2, %c0_i32_1 : i32
    %c0_i32_2 = arith.constant 0 : i32
    %5 = arith.cmpi slt, %1, %c0_i32_2 : i32
    %6 = arith.xori %4, %5 : i1
    %7 = arith.andi %6, %3 : i1
    %8 = arith.addi %2, %1 : i32
    %9 = arith.select %7, %8, %2 : i32
    %c1_i32_3 = arith.constant 1 : i32
    %10 = arith.subi %c1_i32_3, %9 : i32
    %c0_i32_4 = arith.constant 0 : i32
    %11 = arith.cmpi eq, %arg0, %c0_i32_4 : i32
    %12 = arith.extui %11 : i1 to i32
    %c0_i32_5 = arith.constant 0 : i32
    %13 = arith.cmpi ne, %12, %c0_i32_5 : i32
    scf.if %13 {
      %c0_49 = arith.constant 0 : index
      %71 = memref.load %arg1[%c0_49] : memref<8xi32, #tpu.memory_space<smem>>
      %c0_i32_50 = arith.constant 0 : i32
      %c0_i32_51 = arith.constant 0 : i32
      %c0_i32_52 = arith.constant 0 : i32
      %c0_i32_53 = arith.constant 0 : i32
      %72 = tpu.memref_slice %arg2[%71, %c0_i32_53] : memref<24x128xf32, #tpu.memory_space<any>> -> memref<1x128xf32, #tpu.memory_space<any>>
      %c0_i32_54 = arith.constant 0 : i32
      %c0_i32_55 = arith.constant 0 : i32
      %73 = tpu.memref_slice %arg4[%c0_i32_50, %c0_i32_54, %c0_i32_55] : memref<2x8x128xf32, #tpu.memory_space<vmem>> -> memref<1x1x128xf32, #tpu.memory_space<vmem>>
      %74 = tpu.memref_squeeze %73 : memref<1x1x128xf32, #tpu.memory_space<vmem>> -> memref<1x128xf32, #tpu.memory_space<vmem>>
      %75 = tpu.memref_slice %arg5[%c0_i32_51, %c0_i32_52] : memref<2x8x!tpu.dma_semaphore, #tpu.memory_space<semaphore_mem>> -> memref<1x1x!tpu.dma_semaphore, #tpu.memory_space<semaphore_mem>>
      %76 = tpu.memref_squeeze %75 : memref<1x1x!tpu.dma_semaphore, #tpu.memory_space<semaphore_mem>> -> memref<!tpu.dma_semaphore, #tpu.memory_space<semaphore_mem>>
      tpu.enqueue_dma source(%72 : memref<1x128xf32, #tpu.memory_space<any>>) target(%74 : memref<1x128xf32, #tpu.memory_space<vmem>>) target_semaphore(%76 : memref<!tpu.dma_semaphore, #tpu.memory_space<semaphore_mem>>)
      %c1 = arith.constant 1 : index
      %77 = memref.load %arg1[%c1] : memref<8xi32, #tpu.memory_space<smem>>
      %c0_i32_56 = arith.constant 0 : i32
      %c0_i32_57 = arith.constant 0 : i32
      %c1_i32_58 = arith.constant 1 : i32
      %c0_i32_59 = arith.constant 0 : i32
      %78 = tpu.memref_slice %arg2[%77, %c0_i32_59] : memref<24x128xf32, #tpu.memory_space<any>> -> memref<1x128xf32, #tpu.memory_space<any>>
      %c1_i32_60 = arith.constant 1 : i32
      %c0_i32_61 = arith.constant 0 : i32
      %79 = tpu.memref_slice %arg4[%c0_i32_56, %c1_i32_60, %c0_i32_61] : memref<2x8x128xf32, #tpu.memory_space<vmem>> -> memref<1x1x128xf32, #tpu.memory_space<vmem>>
      %80 = tpu.memref_squeeze %79 : memref<1x1x128xf32, #tpu.memory_space<vmem>> -> memref<1x128xf32, #tpu.memory_space<vmem>>
      %81 = tpu.memref_slice %arg5[%c0_i32_57, %c1_i32_58] : memref<2x8x!tpu.dma_semaphore, #tpu.memory_space<semaphore_mem>> -> memref<1x1x!tpu.dma_semaphore, #tpu.memory_space<semaphore_mem>>
      %82 = tpu.memref_squeeze %81 : memref<1x1x!tpu.dma_semaphore, #tpu.memory_space<semaphore_mem>> -> memref<!tpu.dma_semaphore, #tpu.memory_space<semaphore_mem>>
      tpu.enqueue_dma source(%78 : memref<1x128xf32, #tpu.memory_space<any>>) target(%80 : memref<1x128xf32, #tpu.memory_space<vmem>>) target_semaphore(%82 : memref<!tpu.dma_semaphore, #tpu.memory_space<semaphore_mem>>)
      %c2 = arith.constant 2 : index
      %83 = memref.load %arg1[%c2] : memref<8xi32, #tpu.memory_space<smem>>
      %c0_i32_62 = arith.constant 0 : i32
      %c0_i32_63 = arith.constant 0 : i32
      %c2_i32_64 = arith.constant 2 : i32
      %c0_i32_65 = arith.constant 0 : i32
      %84 = tpu.memref_slice %arg2[%83, %c0_i32_65] : memref<24x128xf32, #tpu.memory_space<any>> -> memref<1x128xf32, #tpu.memory_space<any>>
      %c2_i32_66 = arith.constant 2 : i32
      %c0_i32_67 = arith.constant 0 : i32
      %85 = tpu.memref_slice %arg4[%c0_i32_62, %c2_i32_66, %c0_i32_67] : memref<2x8x128xf32, #tpu.memory_space<vmem>> -> memref<1x1x128xf32, #tpu.memory_space<vmem>>
      %86 = tpu.memref_squeeze %85 : memref<1x1x128xf32, #tpu.memory_space<vmem>> -> memref<1x128xf32, #tpu.memory_space<vmem>>
      %87 = tpu.memref_slice %arg5[%c0_i32_63, %c2_i32_64] : memref<2x8x!tpu.dma_semaphore, #tpu.memory_space<semaphore_mem>> -> memref<1x1x!tpu.dma_semaphore, #tpu.memory_space<semaphore_mem>>
      %88 = tpu.memref_squeeze %87 : memref<1x1x!tpu.dma_semaphore, #tpu.memory_space<semaphore_mem>> -> memref<!tpu.dma_semaphore, #tpu.memory_space<semaphore_mem>>
      tpu.enqueue_dma source(%84 : memref<1x128xf32, #tpu.memory_space<any>>) target(%86 : memref<1x128xf32, #tpu.memory_space<vmem>>) target_semaphore(%88 : memref<!tpu.dma_semaphore, #tpu.memory_space<semaphore_mem>>)
      %c3 = arith.constant 3 : index
      %89 = memref.load %arg1[%c3] : memref<8xi32, #tpu.memory_space<smem>>
      %c0_i32_68 = arith.constant 0 : i32
      %c0_i32_69 = arith.constant 0 : i32
      %c3_i32_70 = arith.constant 3 : i32
      %c0_i32_71 = arith.constant 0 : i32
      %90 = tpu.memref_slice %arg2[%89, %c0_i32_71] : memref<24x128xf32, #tpu.memory_space<any>> -> memref<1x128xf32, #tpu.memory_space<any>>
      %c3_i32_72 = arith.constant 3 : i32
      %c0_i32_73 = arith.constant 0 : i32
      %91 = tpu.memref_slice %arg4[%c0_i32_68, %c3_i32_72, %c0_i32_73] : memref<2x8x128xf32, #tpu.memory_space<vmem>> -> memref<1x1x128xf32, #tpu.memory_space<vmem>>
      %92 = tpu.memref_squeeze %91 : memref<1x1x128xf32, #tpu.memory_space<vmem>> -> memref<1x128xf32, #tpu.memory_space<vmem>>
      %93 = tpu.memref_slice %arg5[%c0_i32_69, %c3_i32_70] : memref<2x8x!tpu.dma_semaphore, #tpu.memory_space<semaphore_mem>> -> memref<1x1x!tpu.dma_semaphore, #tpu.memory_space<semaphore_mem>>
      %94 = tpu.memref_squeeze %93 : memref<1x1x!tpu.dma_semaphore, #tpu.memory_space<semaphore_mem>> -> memref<!tpu.dma_semaphore, #tpu.memory_space<semaphore_mem>>
      tpu.enqueue_dma source(%90 : memref<1x128xf32, #tpu.memory_space<any>>) target(%92 : memref<1x128xf32, #tpu.memory_space<vmem>>) target_semaphore(%94 : memref<!tpu.dma_semaphore, #tpu.memory_space<semaphore_mem>>)
      %c4 = arith.constant 4 : index
      %95 = memref.load %arg1[%c4] : memref<8xi32, #tpu.memory_space<smem>>
      %c0_i32_74 = arith.constant 0 : i32
      %c0_i32_75 = arith.constant 0 : i32
      %c4_i32_76 = arith.constant 4 : i32
      %c0_i32_77 = arith.constant 0 : i32
      %96 = tpu.memref_slice %arg2[%95, %c0_i32_77] : memref<24x128xf32, #tpu.memory_space<any>> -> memref<1x128xf32, #tpu.memory_space<any>>
      %c4_i32_78 = arith.constant 4 : i32
      %c0_i32_79 = arith.constant 0 : i32
      %97 = tpu.memref_slice %arg4[%c0_i32_74, %c4_i32_78, %c0_i32_79] : memref<2x8x128xf32, #tpu.memory_space<vmem>> -> memref<1x1x128xf32, #tpu.memory_space<vmem>>
      %98 = tpu.memref_squeeze %97 : memref<1x1x128xf32, #tpu.memory_space<vmem>> -> memref<1x128xf32, #tpu.memory_space<vmem>>
      %99 = tpu.memref_slice %arg5[%c0_i32_75, %c4_i32_76] : memref<2x8x!tpu.dma_semaphore, #tpu.memory_space<semaphore_mem>> -> memref<1x1x!tpu.dma_semaphore, #tpu.memory_space<semaphore_mem>>
      %100 = tpu.memref_squeeze %99 : memref<1x1x!tpu.dma_semaphore, #tpu.memory_space<semaphore_mem>> -> memref<!tpu.dma_semaphore, #tpu.memory_space<semaphore_mem>>
      tpu.enqueue_dma source(%96 : memref<1x128xf32, #tpu.memory_space<any>>) target(%98 : memref<1x128xf32, #tpu.memory_space<vmem>>) target_semaphore(%100 : memref<!tpu.dma_semaphore, #tpu.memory_space<semaphore_mem>>)
      %c5 = arith.constant 5 : index
      %101 = memref.load %arg1[%c5] : memref<8xi32, #tpu.memory_space<smem>>
      %c0_i32_80 = arith.constant 0 : i32
      %c0_i32_81 = arith.constant 0 : i32
      %c5_i32_82 = arith.constant 5 : i32
      %c0_i32_83 = arith.constant 0 : i32
      %102 = tpu.memref_slice %arg2[%101, %c0_i32_83] : memref<24x128xf32, #tpu.memory_space<any>> -> memref<1x128xf32, #tpu.memory_space<any>>
      %c5_i32_84 = arith.constant 5 : i32
      %c0_i32_85 = arith.constant 0 : i32
      %103 = tpu.memref_slice %arg4[%c0_i32_80, %c5_i32_84, %c0_i32_85] : memref<2x8x128xf32, #tpu.memory_space<vmem>> -> memref<1x1x128xf32, #tpu.memory_space<vmem>>
      %104 = tpu.memref_squeeze %103 : memref<1x1x128xf32, #tpu.memory_space<vmem>> -> memref<1x128xf32, #tpu.memory_space<vmem>>
      %105 = tpu.memref_slice %arg5[%c0_i32_81, %c5_i32_82] : memref<2x8x!tpu.dma_semaphore, #tpu.memory_space<semaphore_mem>> -> memref<1x1x!tpu.dma_semaphore, #tpu.memory_space<semaphore_mem>>
      %106 = tpu.memref_squeeze %105 : memref<1x1x!tpu.dma_semaphore, #tpu.memory_space<semaphore_mem>> -> memref<!tpu.dma_semaphore, #tpu.memory_space<semaphore_mem>>
      tpu.enqueue_dma source(%102 : memref<1x128xf32, #tpu.memory_space<any>>) target(%104 : memref<1x128xf32, #tpu.memory_space<vmem>>) target_semaphore(%106 : memref<!tpu.dma_semaphore, #tpu.memory_space<semaphore_mem>>)
      %c6 = arith.constant 6 : index
      %107 = memref.load %arg1[%c6] : memref<8xi32, #tpu.memory_space<smem>>
      %c0_i32_86 = arith.constant 0 : i32
      %c0_i32_87 = arith.constant 0 : i32
      %c6_i32_88 = arith.constant 6 : i32
      %c0_i32_89 = arith.constant 0 : i32
      %108 = tpu.memref_slice %arg2[%107, %c0_i32_89] : memref<24x128xf32, #tpu.memory_space<any>> -> memref<1x128xf32, #tpu.memory_space<any>>
      %c6_i32_90 = arith.constant 6 : i32
      %c0_i32_91 = arith.constant 0 : i32
      %109 = tpu.memref_slice %arg4[%c0_i32_86, %c6_i32_90, %c0_i32_91] : memref<2x8x128xf32, #tpu.memory_space<vmem>> -> memref<1x1x128xf32, #tpu.memory_space<vmem>>
      %110 = tpu.memref_squeeze %109 : memref<1x1x128xf32, #tpu.memory_space<vmem>> -> memref<1x128xf32, #tpu.memory_space<vmem>>
      %111 = tpu.memref_slice %arg5[%c0_i32_87, %c6_i32_88] : memref<2x8x!tpu.dma_semaphore, #tpu.memory_space<semaphore_mem>> -> memref<1x1x!tpu.dma_semaphore, #tpu.memory_space<semaphore_mem>>
      %112 = tpu.memref_squeeze %111 : memref<1x1x!tpu.dma_semaphore, #tpu.memory_space<semaphore_mem>> -> memref<!tpu.dma_semaphore, #tpu.memory_space<semaphore_mem>>
      tpu.enqueue_dma source(%108 : memref<1x128xf32, #tpu.memory_space<any>>) target(%110 : memref<1x128xf32, #tpu.memory_space<vmem>>) target_semaphore(%112 : memref<!tpu.dma_semaphore, #tpu.memory_space<semaphore_mem>>)
      %c7 = arith.constant 7 : index
      %113 = memref.load %arg1[%c7] : memref<8xi32, #tpu.memory_space<smem>>
      %c0_i32_92 = arith.constant 0 : i32
      %c0_i32_93 = arith.constant 0 : i32
      %c7_i32_94 = arith.constant 7 : i32
      %c0_i32_95 = arith.constant 0 : i32
      %114 = tpu.memref_slice %arg2[%113, %c0_i32_95] : memref<24x128xf32, #tpu.memory_space<any>> -> memref<1x128xf32, #tpu.memory_space<any>>
      %c7_i32_96 = arith.constant 7 : i32
      %c0_i32_97 = arith.constant 0 : i32
      %115 = tpu.memref_slice %arg4[%c0_i32_92, %c7_i32_96, %c0_i32_97] : memref<2x8x128xf32, #tpu.memory_space<vmem>> -> memref<1x1x128xf32, #tpu.memory_space<vmem>>
      %116 = tpu.memref_squeeze %115 : memref<1x1x128xf32, #tpu.memory_space<vmem>> -> memref<1x128xf32, #tpu.memory_space<vmem>>
      %117 = tpu.memref_slice %arg5[%c0_i32_93, %c7_i32_94] : memref<2x8x!tpu.dma_semaphore, #tpu.memory_space<semaphore_mem>> -> memref<1x1x!tpu.dma_semaphore, #tpu.memory_space<semaphore_mem>>
      %118 = tpu.memref_squeeze %117 : memref<1x1x!tpu.dma_semaphore, #tpu.memory_space<semaphore_mem>> -> memref<!tpu.dma_semaphore, #tpu.memory_space<semaphore_mem>>
      tpu.enqueue_dma source(%114 : memref<1x128xf32, #tpu.memory_space<any>>) target(%116 : memref<1x128xf32, #tpu.memory_space<vmem>>) target_semaphore(%118 : memref<!tpu.dma_semaphore, #tpu.memory_space<semaphore_mem>>)
    } else {
    }
    %c1_i32_6 = arith.constant 1 : i32
    %14 = arith.addi %arg0, %c1_i32_6 : i32
    %c1_i32_7 = arith.constant 1 : i32
    %15 = arith.cmpi slt, %14, %c1_i32_7 : i32
    %16 = arith.extui %15 : i1 to i32
    %c0_i32_8 = arith.constant 0 : i32
    %17 = arith.cmpi ne, %16, %c0_i32_8 : i32
    scf.if %17 {
      %c1_i32_49 = arith.constant 1 : i32
      %71 = arith.addi %arg0, %c1_i32_49 : i32
      %c8_i32 = arith.constant 8 : i32
      %72 = arith.muli %71, %c8_i32 : i32
      %c0_i32_50 = arith.constant 0 : i32
      %73 = arith.addi %72, %c0_i32_50 : i32
      %74 = arith.index_cast %73 : i32 to index
      %75 = memref.load %arg1[%74] : memref<8xi32, #tpu.memory_space<smem>>
      %c0_i32_51 = arith.constant 0 : i32
      %c0_i32_52 = arith.constant 0 : i32
      %76 = tpu.memref_slice %arg2[%75, %c0_i32_52] : memref<24x128xf32, #tpu.memory_space<any>> -> memref<1x128xf32, #tpu.memory_space<any>>
      %c0_i32_53 = arith.constant 0 : i32
      %c0_i32_54 = arith.constant 0 : i32
      %77 = tpu.memref_slice %arg4[%10, %c0_i32_53, %c0_i32_54] : memref<2x8x128xf32, #tpu.memory_space<vmem>> -> memref<1x1x128xf32, #tpu.memory_space<vmem>>
      %78 = tpu.memref_squeeze %77 : memref<1x1x128xf32, #tpu.memory_space<vmem>> -> memref<1x128xf32, #tpu.memory_space<vmem>>
      %79 = tpu.memref_slice %arg5[%10, %c0_i32_51] : memref<2x8x!tpu.dma_semaphore, #tpu.memory_space<semaphore_mem>> -> memref<1x1x!tpu.dma_semaphore, #tpu.memory_space<semaphore_mem>>
      %80 = tpu.memref_squeeze %79 : memref<1x1x!tpu.dma_semaphore, #tpu.memory_space<semaphore_mem>> -> memref<!tpu.dma_semaphore, #tpu.memory_space<semaphore_mem>>
      tpu.enqueue_dma source(%76 : memref<1x128xf32, #tpu.memory_space<any>>) target(%78 : memref<1x128xf32, #tpu.memory_space<vmem>>) target_semaphore(%80 : memref<!tpu.dma_semaphore, #tpu.memory_space<semaphore_mem>>)
      %c8_i32_55 = arith.constant 8 : i32
      %81 = arith.muli %71, %c8_i32_55 : i32
      %c1_i32_56 = arith.constant 1 : i32
      %82 = arith.addi %81, %c1_i32_56 : i32
      %83 = arith.index_cast %82 : i32 to index
      %84 = memref.load %arg1[%83] : memref<8xi32, #tpu.memory_space<smem>>
      %c1_i32_57 = arith.constant 1 : i32
      %c0_i32_58 = arith.constant 0 : i32
      %85 = tpu.memref_slice %arg2[%84, %c0_i32_58] : memref<24x128xf32, #tpu.memory_space<any>> -> memref<1x128xf32, #tpu.memory_space<any>>
      %c1_i32_59 = arith.constant 1 : i32
      %c0_i32_60 = arith.constant 0 : i32
      %86 = tpu.memref_slice %arg4[%10, %c1_i32_59, %c0_i32_60] : memref<2x8x128xf32, #tpu.memory_space<vmem>> -> memref<1x1x128xf32, #tpu.memory_space<vmem>>
      %87 = tpu.memref_squeeze %86 : memref<1x1x128xf32, #tpu.memory_space<vmem>> -> memref<1x128xf32, #tpu.memory_space<vmem>>
      %88 = tpu.memref_slice %arg5[%10, %c1_i32_57] : memref<2x8x!tpu.dma_semaphore, #tpu.memory_space<semaphore_mem>> -> memref<1x1x!tpu.dma_semaphore, #tpu.memory_space<semaphore_mem>>
      %89 = tpu.memref_squeeze %88 : memref<1x1x!tpu.dma_semaphore, #tpu.memory_space<semaphore_mem>> -> memref<!tpu.dma_semaphore, #tpu.memory_space<semaphore_mem>>
      tpu.enqueue_dma source(%85 : memref<1x128xf32, #tpu.memory_space<any>>) target(%87 : memref<1x128xf32, #tpu.memory_space<vmem>>) target_semaphore(%89 : memref<!tpu.dma_semaphore, #tpu.memory_space<semaphore_mem>>)
      %c8_i32_61 = arith.constant 8 : i32
      %90 = arith.muli %71, %c8_i32_61 : i32
      %c2_i32_62 = arith.constant 2 : i32
      %91 = arith.addi %90, %c2_i32_62 : i32
      %92 = arith.index_cast %91 : i32 to index
      %93 = memref.load %arg1[%92] : memref<8xi32, #tpu.memory_space<smem>>
      %c2_i32_63 = arith.constant 2 : i32
      %c0_i32_64 = arith.constant 0 : i32
      %94 = tpu.memref_slice %arg2[%93, %c0_i32_64] : memref<24x128xf32, #tpu.memory_space<any>> -> memref<1x128xf32, #tpu.memory_space<any>>
      %c2_i32_65 = arith.constant 2 : i32
      %c0_i32_66 = arith.constant 0 : i32
      %95 = tpu.memref_slice %arg4[%10, %c2_i32_65, %c0_i32_66] : memref<2x8x128xf32, #tpu.memory_space<vmem>> -> memref<1x1x128xf32, #tpu.memory_space<vmem>>
      %96 = tpu.memref_squeeze %95 : memref<1x1x128xf32, #tpu.memory_space<vmem>> -> memref<1x128xf32, #tpu.memory_space<vmem>>
      %97 = tpu.memref_slice %arg5[%10, %c2_i32_63] : memref<2x8x!tpu.dma_semaphore, #tpu.memory_space<semaphore_mem>> -> memref<1x1x!tpu.dma_semaphore, #tpu.memory_space<semaphore_mem>>
      %98 = tpu.memref_squeeze %97 : memref<1x1x!tpu.dma_semaphore, #tpu.memory_space<semaphore_mem>> -> memref<!tpu.dma_semaphore, #tpu.memory_space<semaphore_mem>>
      tpu.enqueue_dma source(%94 : memref<1x128xf32, #tpu.memory_space<any>>) target(%96 : memref<1x128xf32, #tpu.memory_space<vmem>>) target_semaphore(%98 : memref<!tpu.dma_semaphore, #tpu.memory_space<semaphore_mem>>)
      %c8_i32_67 = arith.constant 8 : i32
      %99 = arith.muli %71, %c8_i32_67 : i32
      %c3_i32_68 = arith.constant 3 : i32
      %100 = arith.addi %99, %c3_i32_68 : i32
      %101 = arith.index_cast %100 : i32 to index
      %102 = memref.load %arg1[%101] : memref<8xi32, #tpu.memory_space<smem>>
      %c3_i32_69 = arith.constant 3 : i32
      %c0_i32_70 = arith.constant 0 : i32
      %103 = tpu.memref_slice %arg2[%102, %c0_i32_70] : memref<24x128xf32, #tpu.memory_space<any>> -> memref<1x128xf32, #tpu.memory_space<any>>
      %c3_i32_71 = arith.constant 3 : i32
      %c0_i32_72 = arith.constant 0 : i32
      %104 = tpu.memref_slice %arg4[%10, %c3_i32_71, %c0_i32_72] : memref<2x8x128xf32, #tpu.memory_space<vmem>> -> memref<1x1x128xf32, #tpu.memory_space<vmem>>
      %105 = tpu.memref_squeeze %104 : memref<1x1x128xf32, #tpu.memory_space<vmem>> -> memref<1x128xf32, #tpu.memory_space<vmem>>
      %106 = tpu.memref_slice %arg5[%10, %c3_i32_69] : memref<2x8x!tpu.dma_semaphore, #tpu.memory_space<semaphore_mem>> -> memref<1x1x!tpu.dma_semaphore, #tpu.memory_space<semaphore_mem>>
      %107 = tpu.memref_squeeze %106 : memref<1x1x!tpu.dma_semaphore, #tpu.memory_space<semaphore_mem>> -> memref<!tpu.dma_semaphore, #tpu.memory_space<semaphore_mem>>
      tpu.enqueue_dma source(%103 : memref<1x128xf32, #tpu.memory_space<any>>) target(%105 : memref<1x128xf32, #tpu.memory_space<vmem>>) target_semaphore(%107 : memref<!tpu.dma_semaphore, #tpu.memory_space<semaphore_mem>>)
      %c8_i32_73 = arith.constant 8 : i32
      %108 = arith.muli %71, %c8_i32_73 : i32
      %c4_i32_74 = arith.constant 4 : i32
      %109 = arith.addi %108, %c4_i32_74 : i32
      %110 = arith.index_cast %109 : i32 to index
      %111 = memref.load %arg1[%110] : memref<8xi32, #tpu.memory_space<smem>>
      %c4_i32_75 = arith.constant 4 : i32
      %c0_i32_76 = arith.constant 0 : i32
      %112 = tpu.memref_slice %arg2[%111, %c0_i32_76] : memref<24x128xf32, #tpu.memory_space<any>> -> memref<1x128xf32, #tpu.memory_space<any>>
      %c4_i32_77 = arith.constant 4 : i32
      %c0_i32_78 = arith.constant 0 : i32
      %113 = tpu.memref_slice %arg4[%10, %c4_i32_77, %c0_i32_78] : memref<2x8x128xf32, #tpu.memory_space<vmem>> -> memref<1x1x128xf32, #tpu.memory_space<vmem>>
      %114 = tpu.memref_squeeze %113 : memref<1x1x128xf32, #tpu.memory_space<vmem>> -> memref<1x128xf32, #tpu.memory_space<vmem>>
      %115 = tpu.memref_slice %arg5[%10, %c4_i32_75] : memref<2x8x!tpu.dma_semaphore, #tpu.memory_space<semaphore_mem>> -> memref<1x1x!tpu.dma_semaphore, #tpu.memory_space<semaphore_mem>>
      %116 = tpu.memref_squeeze %115 : memref<1x1x!tpu.dma_semaphore, #tpu.memory_space<semaphore_mem>> -> memref<!tpu.dma_semaphore, #tpu.memory_space<semaphore_mem>>
      tpu.enqueue_dma source(%112 : memref<1x128xf32, #tpu.memory_space<any>>) target(%114 : memref<1x128xf32, #tpu.memory_space<vmem>>) target_semaphore(%116 : memref<!tpu.dma_semaphore, #tpu.memory_space<semaphore_mem>>)
      %c8_i32_79 = arith.constant 8 : i32
      %117 = arith.muli %71, %c8_i32_79 : i32
      %c5_i32_80 = arith.constant 5 : i32
      %118 = arith.addi %117, %c5_i32_80 : i32
      %119 = arith.index_cast %118 : i32 to index
      %120 = memref.load %arg1[%119] : memref<8xi32, #tpu.memory_space<smem>>
      %c5_i32_81 = arith.constant 5 : i32
      %c0_i32_82 = arith.constant 0 : i32
      %121 = tpu.memref_slice %arg2[%120, %c0_i32_82] : memref<24x128xf32, #tpu.memory_space<any>> -> memref<1x128xf32, #tpu.memory_space<any>>
      %c5_i32_83 = arith.constant 5 : i32
      %c0_i32_84 = arith.constant 0 : i32
      %122 = tpu.memref_slice %arg4[%10, %c5_i32_83, %c0_i32_84] : memref<2x8x128xf32, #tpu.memory_space<vmem>> -> memref<1x1x128xf32, #tpu.memory_space<vmem>>
      %123 = tpu.memref_squeeze %122 : memref<1x1x128xf32, #tpu.memory_space<vmem>> -> memref<1x128xf32, #tpu.memory_space<vmem>>
      %124 = tpu.memref_slice %arg5[%10, %c5_i32_81] : memref<2x8x!tpu.dma_semaphore, #tpu.memory_space<semaphore_mem>> -> memref<1x1x!tpu.dma_semaphore, #tpu.memory_space<semaphore_mem>>
      %125 = tpu.memref_squeeze %124 : memref<1x1x!tpu.dma_semaphore, #tpu.memory_space<semaphore_mem>> -> memref<!tpu.dma_semaphore, #tpu.memory_space<semaphore_mem>>
      tpu.enqueue_dma source(%121 : memref<1x128xf32, #tpu.memory_space<any>>) target(%123 : memref<1x128xf32, #tpu.memory_space<vmem>>) target_semaphore(%125 : memref<!tpu.dma_semaphore, #tpu.memory_space<semaphore_mem>>)
      %c8_i32_85 = arith.constant 8 : i32
      %126 = arith.muli %71, %c8_i32_85 : i32
      %c6_i32_86 = arith.constant 6 : i32
      %127 = arith.addi %126, %c6_i32_86 : i32
      %128 = arith.index_cast %127 : i32 to index
      %129 = memref.load %arg1[%128] : memref<8xi32, #tpu.memory_space<smem>>
      %c6_i32_87 = arith.constant 6 : i32
      %c0_i32_88 = arith.constant 0 : i32
      %130 = tpu.memref_slice %arg2[%129, %c0_i32_88] : memref<24x128xf32, #tpu.memory_space<any>> -> memref<1x128xf32, #tpu.memory_space<any>>
      %c6_i32_89 = arith.constant 6 : i32
      %c0_i32_90 = arith.constant 0 : i32
      %131 = tpu.memref_slice %arg4[%10, %c6_i32_89, %c0_i32_90] : memref<2x8x128xf32, #tpu.memory_space<vmem>> -> memref<1x1x128xf32, #tpu.memory_space<vmem>>
      %132 = tpu.memref_squeeze %131 : memref<1x1x128xf32, #tpu.memory_space<vmem>> -> memref<1x128xf32, #tpu.memory_space<vmem>>
      %133 = tpu.memref_slice %arg5[%10, %c6_i32_87] : memref<2x8x!tpu.dma_semaphore, #tpu.memory_space<semaphore_mem>> -> memref<1x1x!tpu.dma_semaphore, #tpu.memory_space<semaphore_mem>>
      %134 = tpu.memref_squeeze %133 : memref<1x1x!tpu.dma_semaphore, #tpu.memory_space<semaphore_mem>> -> memref<!tpu.dma_semaphore, #tpu.memory_space<semaphore_mem>>
      tpu.enqueue_dma source(%130 : memref<1x128xf32, #tpu.memory_space<any>>) target(%132 : memref<1x128xf32, #tpu.memory_space<vmem>>) target_semaphore(%134 : memref<!tpu.dma_semaphore, #tpu.memory_space<semaphore_mem>>)
      %c8_i32_91 = arith.constant 8 : i32
      %135 = arith.muli %71, %c8_i32_91 : i32
      %c7_i32_92 = arith.constant 7 : i32
      %136 = arith.addi %135, %c7_i32_92 : i32
      %137 = arith.index_cast %136 : i32 to index
      %138 = memref.load %arg1[%137] : memref<8xi32, #tpu.memory_space<smem>>
      %c7_i32_93 = arith.constant 7 : i32
      %c0_i32_94 = arith.constant 0 : i32
      %139 = tpu.memref_slice %arg2[%138, %c0_i32_94] : memref<24x128xf32, #tpu.memory_space<any>> -> memref<1x128xf32, #tpu.memory_space<any>>
      %c7_i32_95 = arith.constant 7 : i32
      %c0_i32_96 = arith.constant 0 : i32
      %140 = tpu.memref_slice %arg4[%10, %c7_i32_95, %c0_i32_96] : memref<2x8x128xf32, #tpu.memory_space<vmem>> -> memref<1x1x128xf32, #tpu.memory_space<vmem>>
      %141 = tpu.memref_squeeze %140 : memref<1x1x128xf32, #tpu.memory_space<vmem>> -> memref<1x128xf32, #tpu.memory_space<vmem>>
      %142 = tpu.memref_slice %arg5[%10, %c7_i32_93] : memref<2x8x!tpu.dma_semaphore, #tpu.memory_space<semaphore_mem>> -> memref<1x1x!tpu.dma_semaphore, #tpu.memory_space<semaphore_mem>>
      %143 = tpu.memref_squeeze %142 : memref<1x1x!tpu.dma_semaphore, #tpu.memory_space<semaphore_mem>> -> memref<!tpu.dma_semaphore, #tpu.memory_space<semaphore_mem>>
      tpu.enqueue_dma source(%139 : memref<1x128xf32, #tpu.memory_space<any>>) target(%141 : memref<1x128xf32, #tpu.memory_space<vmem>>) target_semaphore(%143 : memref<!tpu.dma_semaphore, #tpu.memory_space<semaphore_mem>>)
    } else {
    }
    %c0_i32_9 = arith.constant 0 : i32
    %c0_i32_10 = arith.constant 0 : i32
    %c0_i32_11 = arith.constant 0 : i32
    %18 = tpu.memref_slice %arg2[%c0_i32_10, %c0_i32_11] : memref<24x128xf32, #tpu.memory_space<any>> -> memref<1x128xf32, #tpu.memory_space<any>>
    %c0_i32_12 = arith.constant 0 : i32
    %c0_i32_13 = arith.constant 0 : i32
    %19 = tpu.memref_slice %arg4[%9, %c0_i32_12, %c0_i32_13] : memref<2x8x128xf32, #tpu.memory_space<vmem>> -> memref<1x1x128xf32, #tpu.memory_space<vmem>>
    %20 = tpu.memref_squeeze %19 : memref<1x1x128xf32, #tpu.memory_space<vmem>> -> memref<1x128xf32, #tpu.memory_space<vmem>>
    %21 = tpu.memref_slice %arg5[%9, %c0_i32_9] : memref<2x8x!tpu.dma_semaphore, #tpu.memory_space<semaphore_mem>> -> memref<1x1x!tpu.dma_semaphore, #tpu.memory_space<semaphore_mem>>
    %22 = tpu.memref_squeeze %21 : memref<1x1x!tpu.dma_semaphore, #tpu.memory_space<semaphore_mem>> -> memref<!tpu.dma_semaphore, #tpu.memory_space<semaphore_mem>>
    tpu.wait_dma2 semaphore(%22 : memref<!tpu.dma_semaphore, #tpu.memory_space<semaphore_mem>>) src(%18 : memref<1x128xf32, #tpu.memory_space<any>>) dst(%20 : memref<1x128xf32, #tpu.memory_space<vmem>>)
    %c1_i32_14 = arith.constant 1 : i32
    %c0_i32_15 = arith.constant 0 : i32
    %c0_i32_16 = arith.constant 0 : i32
    %23 = tpu.memref_slice %arg2[%c0_i32_15, %c0_i32_16] : memref<24x128xf32, #tpu.memory_space<any>> -> memref<1x128xf32, #tpu.memory_space<any>>
    %c1_i32_17 = arith.constant 1 : i32
    %c0_i32_18 = arith.constant 0 : i32
    %24 = tpu.memref_slice %arg4[%9, %c1_i32_17, %c0_i32_18] : memref<2x8x128xf32, #tpu.memory_space<vmem>> -> memref<1x1x128xf32, #tpu.memory_space<vmem>>
    %25 = tpu.memref_squeeze %24 : memref<1x1x128xf32, #tpu.memory_space<vmem>> -> memref<1x128xf32, #tpu.memory_space<vmem>>
    %26 = tpu.memref_slice %arg5[%9, %c1_i32_14] : memref<2x8x!tpu.dma_semaphore, #tpu.memory_space<semaphore_mem>> -> memref<1x1x!tpu.dma_semaphore, #tpu.memory_space<semaphore_mem>>
    %27 = tpu.memref_squeeze %26 : memref<1x1x!tpu.dma_semaphore, #tpu.memory_space<semaphore_mem>> -> memref<!tpu.dma_semaphore, #tpu.memory_space<semaphore_mem>>
    tpu.wait_dma2 semaphore(%27 : memref<!tpu.dma_semaphore, #tpu.memory_space<semaphore_mem>>) src(%23 : memref<1x128xf32, #tpu.memory_space<any>>) dst(%25 : memref<1x128xf32, #tpu.memory_space<vmem>>)
    %c2_i32_19 = arith.constant 2 : i32
    %c0_i32_20 = arith.constant 0 : i32
    %c0_i32_21 = arith.constant 0 : i32
    %28 = tpu.memref_slice %arg2[%c0_i32_20, %c0_i32_21] : memref<24x128xf32, #tpu.memory_space<any>> -> memref<1x128xf32, #tpu.memory_space<any>>
    %c2_i32_22 = arith.constant 2 : i32
    %c0_i32_23 = arith.constant 0 : i32
    %29 = tpu.memref_slice %arg4[%9, %c2_i32_22, %c0_i32_23] : memref<2x8x128xf32, #tpu.memory_space<vmem>> -> memref<1x1x128xf32, #tpu.memory_space<vmem>>
    %30 = tpu.memref_squeeze %29 : memref<1x1x128xf32, #tpu.memory_space<vmem>> -> memref<1x128xf32, #tpu.memory_space<vmem>>
    %31 = tpu.memref_slice %arg5[%9, %c2_i32_19] : memref<2x8x!tpu.dma_semaphore, #tpu.memory_space<semaphore_mem>> -> memref<1x1x!tpu.dma_semaphore, #tpu.memory_space<semaphore_mem>>
    %32 = tpu.memref_squeeze %31 : memref<1x1x!tpu.dma_semaphore, #tpu.memory_space<semaphore_mem>> -> memref<!tpu.dma_semaphore, #tpu.memory_space<semaphore_mem>>
    tpu.wait_dma2 semaphore(%32 : memref<!tpu.dma_semaphore, #tpu.memory_space<semaphore_mem>>) src(%28 : memref<1x128xf32, #tpu.memory_space<any>>) dst(%30 : memref<1x128xf32, #tpu.memory_space<vmem>>)
    %c3_i32 = arith.constant 3 : i32
    %c0_i32_24 = arith.constant 0 : i32
    %c0_i32_25 = arith.constant 0 : i32
    %33 = tpu.memref_slice %arg2[%c0_i32_24, %c0_i32_25] : memref<24x128xf32, #tpu.memory_space<any>> -> memref<1x128xf32, #tpu.memory_space<any>>
    %c3_i32_26 = arith.constant 3 : i32
    %c0_i32_27 = arith.constant 0 : i32
    %34 = tpu.memref_slice %arg4[%9, %c3_i32_26, %c0_i32_27] : memref<2x8x128xf32, #tpu.memory_space<vmem>> -> memref<1x1x128xf32, #tpu.memory_space<vmem>>
    %35 = tpu.memref_squeeze %34 : memref<1x1x128xf32, #tpu.memory_space<vmem>> -> memref<1x128xf32, #tpu.memory_space<vmem>>
    %36 = tpu.memref_slice %arg5[%9, %c3_i32] : memref<2x8x!tpu.dma_semaphore, #tpu.memory_space<semaphore_mem>> -> memref<1x1x!tpu.dma_semaphore, #tpu.memory_space<semaphore_mem>>
    %37 = tpu.memref_squeeze %36 : memref<1x1x!tpu.dma_semaphore, #tpu.memory_space<semaphore_mem>> -> memref<!tpu.dma_semaphore, #tpu.memory_space<semaphore_mem>>
    tpu.wait_dma2 semaphore(%37 : memref<!tpu.dma_semaphore, #tpu.memory_space<semaphore_mem>>) src(%33 : memref<1x128xf32, #tpu.memory_space<any>>) dst(%35 : memref<1x128xf32, #tpu.memory_space<vmem>>)
    %c4_i32 = arith.constant 4 : i32
    %c0_i32_28 = arith.constant 0 : i32
    %c0_i32_29 = arith.constant 0 : i32
    %38 = tpu.memref_slice %arg2[%c0_i32_28, %c0_i32_29] : memref<24x128xf32, #tpu.memory_space<any>> -> memref<1x128xf32, #tpu.memory_space<any>>
    %c4_i32_30 = arith.constant 4 : i32
    %c0_i32_31 = arith.constant 0 : i32
    %39 = tpu.memref_slice %arg4[%9, %c4_i32_30, %c0_i32_31] : memref<2x8x128xf32, #tpu.memory_space<vmem>> -> memref<1x1x128xf32, #tpu.memory_space<vmem>>
    %40 = tpu.memref_squeeze %39 : memref<1x1x128xf32, #tpu.memory_space<vmem>> -> memref<1x128xf32, #tpu.memory_space<vmem>>
    %41 = tpu.memref_slice %arg5[%9, %c4_i32] : memref<2x8x!tpu.dma_semaphore, #tpu.memory_space<semaphore_mem>> -> memref<1x1x!tpu.dma_semaphore, #tpu.memory_space<semaphore_mem>>
    %42 = tpu.memref_squeeze %41 : memref<1x1x!tpu.dma_semaphore, #tpu.memory_space<semaphore_mem>> -> memref<!tpu.dma_semaphore, #tpu.memory_space<semaphore_mem>>
    tpu.wait_dma2 semaphore(%42 : memref<!tpu.dma_semaphore, #tpu.memory_space<semaphore_mem>>) src(%38 : memref<1x128xf32, #tpu.memory_space<any>>) dst(%40 : memref<1x128xf32, #tpu.memory_space<vmem>>)
    %c5_i32 = arith.constant 5 : i32
    %c0_i32_32 = arith.constant 0 : i32
    %c0_i32_33 = arith.constant 0 : i32
    %43 = tpu.memref_slice %arg2[%c0_i32_32, %c0_i32_33] : memref<24x128xf32, #tpu.memory_space<any>> -> memref<1x128xf32, #tpu.memory_space<any>>
    %c5_i32_34 = arith.constant 5 : i32
    %c0_i32_35 = arith.constant 0 : i32
    %44 = tpu.memref_slice %arg4[%9, %c5_i32_34, %c0_i32_35] : memref<2x8x128xf32, #tpu.memory_space<vmem>> -> memref<1x1x128xf32, #tpu.memory_space<vmem>>
    %45 = tpu.memref_squeeze %44 : memref<1x1x128xf32, #tpu.memory_space<vmem>> -> memref<1x128xf32, #tpu.memory_space<vmem>>
    %46 = tpu.memref_slice %arg5[%9, %c5_i32] : memref<2x8x!tpu.dma_semaphore, #tpu.memory_space<semaphore_mem>> -> memref<1x1x!tpu.dma_semaphore, #tpu.memory_space<semaphore_mem>>
    %47 = tpu.memref_squeeze %46 : memref<1x1x!tpu.dma_semaphore, #tpu.memory_space<semaphore_mem>> -> memref<!tpu.dma_semaphore, #tpu.memory_space<semaphore_mem>>
    tpu.wait_dma2 semaphore(%47 : memref<!tpu.dma_semaphore, #tpu.memory_space<semaphore_mem>>) src(%43 : memref<1x128xf32, #tpu.memory_space<any>>) dst(%45 : memref<1x128xf32, #tpu.memory_space<vmem>>)
    %c6_i32 = arith.constant 6 : i32
    %c0_i32_36 = arith.constant 0 : i32
    %c0_i32_37 = arith.constant 0 : i32
    %48 = tpu.memref_slice %arg2[%c0_i32_36, %c0_i32_37] : memref<24x128xf32, #tpu.memory_space<any>> -> memref<1x128xf32, #tpu.memory_space<any>>
    %c6_i32_38 = arith.constant 6 : i32
    %c0_i32_39 = arith.constant 0 : i32
    %49 = tpu.memref_slice %arg4[%9, %c6_i32_38, %c0_i32_39] : memref<2x8x128xf32, #tpu.memory_space<vmem>> -> memref<1x1x128xf32, #tpu.memory_space<vmem>>
    %50 = tpu.memref_squeeze %49 : memref<1x1x128xf32, #tpu.memory_space<vmem>> -> memref<1x128xf32, #tpu.memory_space<vmem>>
    %51 = tpu.memref_slice %arg5[%9, %c6_i32] : memref<2x8x!tpu.dma_semaphore, #tpu.memory_space<semaphore_mem>> -> memref<1x1x!tpu.dma_semaphore, #tpu.memory_space<semaphore_mem>>
    %52 = tpu.memref_squeeze %51 : memref<1x1x!tpu.dma_semaphore, #tpu.memory_space<semaphore_mem>> -> memref<!tpu.dma_semaphore, #tpu.memory_space<semaphore_mem>>
    tpu.wait_dma2 semaphore(%52 : memref<!tpu.dma_semaphore, #tpu.memory_space<semaphore_mem>>) src(%48 : memref<1x128xf32, #tpu.memory_space<any>>) dst(%50 : memref<1x128xf32, #tpu.memory_space<vmem>>)
    %c7_i32 = arith.constant 7 : i32
    %c0_i32_40 = arith.constant 0 : i32
    %c0_i32_41 = arith.constant 0 : i32
    %53 = tpu.memref_slice %arg2[%c0_i32_40, %c0_i32_41] : memref<24x128xf32, #tpu.memory_space<any>> -> memref<1x128xf32, #tpu.memory_space<any>>
    %c7_i32_42 = arith.constant 7 : i32
    %c0_i32_43 = arith.constant 0 : i32
    %54 = tpu.memref_slice %arg4[%9, %c7_i32_42, %c0_i32_43] : memref<2x8x128xf32, #tpu.memory_space<vmem>> -> memref<1x1x128xf32, #tpu.memory_space<vmem>>
    %55 = tpu.memref_squeeze %54 : memref<1x1x128xf32, #tpu.memory_space<vmem>> -> memref<1x128xf32, #tpu.memory_space<vmem>>
    %56 = tpu.memref_slice %arg5[%9, %c7_i32] : memref<2x8x!tpu.dma_semaphore, #tpu.memory_space<semaphore_mem>> -> memref<1x1x!tpu.dma_semaphore, #tpu.memory_space<semaphore_mem>>
    %57 = tpu.memref_squeeze %56 : memref<1x1x!tpu.dma_semaphore, #tpu.memory_space<semaphore_mem>> -> memref<!tpu.dma_semaphore, #tpu.memory_space<semaphore_mem>>
    tpu.wait_dma2 semaphore(%57 : memref<!tpu.dma_semaphore, #tpu.memory_space<semaphore_mem>>) src(%53 : memref<1x128xf32, #tpu.memory_space<any>>) dst(%55 : memref<1x128xf32, #tpu.memory_space<vmem>>)
    %58 = arith.index_cast %9 : i32 to index
    %c0 = arith.constant 0 : index
    %c0_44 = arith.constant 0 : index
    %59 = vector.load %arg4[%58, %c0, %c0_44] : memref<2x8x128xf32, #tpu.memory_space<vmem>>, vector<1x8x128xf32>
    %60 = vector.shape_cast %59 : vector<1x8x128xf32> to vector<8x128xf32>
    %61 = arith.mulf %60, %60 : vector<8x128xf32>
    %cst = arith.constant dense<0.000000e+00> : vector<8xf32>
    %62 = vector.multi_reduction <add>, %61, %cst [1] : vector<8x128xf32> to vector<8xf32>
    %63 = vector.shape_cast %62 : vector<8xf32> to vector<8x1xf32>
    %cst_45 = arith.constant 9.99999996E-13 : f32
    %cst_46 = arith.constant 9.99999996E-13 : f32
    %64 = arith.mulf %cst_45, %cst_46 : f32
    %65 = vector.broadcast %64 : f32 to vector<8x1xf32>
    %66 = arith.maximumf %63, %65 : vector<8x1xf32>
    %67 = math.rsqrt %66 : vector<8x1xf32>
    %68 = vector.broadcast %67 : vector<8x1xf32> to vector<8x128xf32>
    %69 = arith.mulf %60, %68 : vector<8x128xf32>
    %c0_47 = arith.constant 0 : index
    %c0_48 = arith.constant 0 : index
    %70 = vector.load %arg3[%c0_47, %c0_48] : memref<8x128xf32, #tpu.memory_space<vmem>>, vector<8x128xf32>
    tpu.vector_store %arg3[%c0_47, %c0_48], %69 {strides = array<i32>} : memref<8x128xf32, #tpu.memory_space<vmem>>, vector<8x128xf32>,
    return
  }
  func.func @transform_1(%arg0: i32, %arg1: memref<8xi32, #tpu.memory_space<smem>>) -> (i32, i32) {
    %c0_i32 = arith.constant 0 : i32
    %c0_i32_0 = arith.constant 0 : i32
    return %arg0, %c0_i32 : i32, i32
  }
}

</mosaic_0001>

<bundles_post_ra>
// kernel: tpu_custom_call.1
= control target key start
LH: loop header
LB: loop body
LE: loop exit
PB: predicated region body
PF: predicated region fallthrough
CT: control target
= control target key end

     0   :  { %s1050_s0 = inlined_call_operand.hbm [shape: s32[8], index: 0, kind: input, shape index: {}]   ;;  %s1051_s1 = inlined_call_operand.hbm [shape: f32[24,128], index: 1, kind: input, shape index: {}]   ;;  %s1052_s2 = inlined_call_operand.hbm [shape: f32[8,128], index: 2, kind: output, shape index: {}]  }
   0x1   :  { %s629_s11 = scalar_lea.hbm %s1050_s0, 16 }
   0x2   :  { %p630_p0 = scmp.ne.s32.totalorder %s1050_s0, %s629_s11  ;;  %p633_p1 = scmp.lt.u32.totalorder %s629_s11, %s1050_s0 }
   0x4   :  { %p635_p2 = pnand %p633_p1, %p630_p0 }
   0x6   :  { %638 = shalt.err (!%p635_p2)  }
   0x7   :  { %s873_s16 = smov [#allocation5]  }
   0x8   :  { %8 = dma.hbm_to_smem %s1050_s0, 16, %s873_s16, [#allocation4] }
   0x9   :  { %853 = dma.done.wait [#allocation4], 16 }
   0xa   :  { %854 = vsyncadd [#allocation4], 4294967280 }
   0xb   :  { %10 = sfence }
   0xc   :  { %11 = vsyncpa [#allocation7], 0  ;;  %s25_s19 = sld [smem:[#allocation5]]  ;;  %s874_s20 = smov [#allocation2]  }
   0xd   :  { %s35_s21 = sshll.u32 %s874_s20, 4  ;;  %s910_s22 = sld [smem:[#allocation5 + $0x1]]  ;;  %s912_s21 = int_to_ptr.vmem [resolvable:$true] %s35_s21 }
   0xe   :  { %s875_s23 = smov [#allocation2 + $0x1]   ;;  %s914_s25 = sld [smem:[#allocation5 + $0x2]] }
   0xf   :  { %s51_s24 = sshll.u32 %s875_s23, 4  ;;  %s876_s26 = smov [#allocation2 + $0x2]   ;;  %s916_s24 = int_to_ptr.vmem [resolvable:$true] %s51_s24 }
  0x10   :  { %s67_s0 = sshll.u32 %s876_s26, 4  ;;  %s918_s27 = sld [smem:[#allocation5 + $0x3]]  ;;  %s920_s0 = int_to_ptr.vmem [resolvable:$true] %s67_s0 }
  0x11   :  { %s929_s8 = scalar_lea.hbm %s1051_s1, 384 }
  0x12   :  { %s570_s28 = sshll.u32 %s25_s19, 4 }
  0x13   :  { %s27_s3 = scalar_lea.hbm %s1051_s1, %s570_s28  ;;  %s572_s4 = sshll.u32 %s910_s22, 4 }
  0x14   :  { %s639_s5 = scalar_lea.hbm %s27_s3, 16  ;;  %p642_p4 = scmp.lt.u32.totalorder %s27_s3, %s1051_s1 }
  0x15   :  { %p640_p3 = scmp.ne.s32.totalorder %s27_s3, %s639_s5  ;;  %p643_p5 = scmp.lt.u32.totalorder %s929_s8, %s639_s5 }
  0x16   :  { %p645_p7 = scmp.lt.u32.totalorder %s639_s5, %s27_s3 }
  0x17   :  { %p644_p6 = por %p643_p5, %p642_p4 }
  0x19   :  { %p646_p8 = por %p645_p7, %p644_p6 }
  0x1b   :  { %p647_p9 = pnand %p646_p8, %p640_p3 }
  0x1d   :  { %650 = shalt.err (!%p647_p9)  }
  0x1e   :  { %s651_s11 = scalar_lea.vmem %s912_s21, 16  ;;  %s938_s12 = scalar_lea.vmem %s912_s21, 256 }
  0x1f   :  { %p652_p10 = scmp.ne.s32.totalorder %s912_s21, %s651_s11  ;;  %p656_p11 = scmp.lt.s32.totalorder %s912_s21, %s912_s21 }
  0x20   :  { %p657_p12 = scmp.lt.s32.totalorder %s938_s12, %s651_s11 }
  0x22   :  { %p658_p13 = por %p657_p12, %p656_p11 }
  0x24   :  { %p659_p0 = pnand %p658_p13, %p652_p10 }
  0x26   :  { %662 = shalt.err (!%p659_p0)  }
  0x27   :  { %38 = dma.hbm_to_vmem [thread:$0]  %s27_s3, 16, %s912_s21, [#allocation3] }
  0x28   :  { %s41_s15 = scalar_lea.hbm %s1051_s1, %s572_s4  ;;  %s574_s16 = sshll.u32 %s914_s25, 4 }
  0x29   :  { %s663_s17 = scalar_lea.hbm %s41_s15, 16  ;;  %p666_p2 = scmp.lt.u32.totalorder %s41_s15, %s1051_s1 }
  0x2a   :  { %p664_p1 = scmp.ne.s32.totalorder %s41_s15, %s663_s17  ;;  %p667_p3 = scmp.lt.u32.totalorder %s929_s8, %s663_s17 }
  0x2b   :  { %p669_p5 = scmp.lt.u32.totalorder %s663_s17, %s41_s15 }
  0x2c   :  { %p668_p4 = por %p667_p3, %p666_p2 }
  0x2e   :  { %p670_p6 = por %p669_p5, %p668_p4 }
  0x30   :  { %p671_p7 = pnand %p670_p6, %p664_p1 }
  0x32   :  { %674 = shalt.err (!%p671_p7)  }
  0x33   :  { %s675_s20 = scalar_lea.vmem %s916_s24, 16  ;;  %p680_p9 = scmp.lt.s32.totalorder %s916_s24, %s912_s21 }
  0x34   :  { %p676_p8 = scmp.ne.s32.totalorder %s916_s24, %s675_s20  ;;  %p681_p10 = scmp.lt.s32.totalorder %s938_s12, %s675_s20 }
  0x36   :  { %p682_p11 = por %p681_p10, %p680_p9 }
  0x38   :  { %p683_p12 = pnand %p682_p11, %p676_p8 }
  0x3a   :  { %686 = shalt.err (!%p683_p12)  }
  0x3b   :  { %54 = dma.hbm_to_vmem [thread:$0]  %s41_s15, 16, %s916_s24, [#allocation3 + $0x1] }
  0x3c   :  { %s57_s25 = scalar_lea.hbm %s1051_s1, %s574_s16  ;;  %s576_s26 = sshll.u32 %s918_s27, 4 }
  0x3d   :  { %s687_s28 = scalar_lea.hbm %s57_s25, 16  ;;  %p690_p0 = scmp.lt.u32.totalorder %s57_s25, %s1051_s1 }
  0x3e   :  { %p688_p13 = scmp.ne.s32.totalorder %s57_s25, %s687_s28  ;;  %p691_p1 = scmp.lt.u32.totalorder %s929_s8, %s687_s28 }
  0x3f   :  { %p693_p3 = scmp.lt.u32.totalorder %s687_s28, %s57_s25 }
  0x40   :  { %p692_p2 = por %p691_p1, %p690_p0 }
  0x42   :  { %p694_p4 = por %p693_p3, %p692_p2 }
  0x44   :  { %p695_p5 = pnand %p694_p4, %p688_p13 }
  0x46   :  { %698 = shalt.err (!%p695_p5)  }
  0x47   :  { %s699_s24 = scalar_lea.vmem %s920_s0, 16  ;;  %p704_p7 = scmp.lt.s32.totalorder %s920_s0, %s912_s21 }
  0x48   :  { %p700_p6 = scmp.ne.s32.totalorder %s920_s0, %s699_s24  ;;  %p705_p8 = scmp.lt.s32.totalorder %s938_s12, %s699_s24 }
  0x4a   :  { %p706_p9 = por %p705_p8, %p704_p7 }
  0x4c   :  { %p707_p10 = pnand %p706_p9, %p700_p6 }
  0x4e   :  { %710 = shalt.err (!%p707_p10)  }
  0x4f   :  { %70 = dma.hbm_to_vmem [thread:$0]  %s57_s25, 16, %s920_s0, [#allocation3 + $0x2] }
  0x50   :  { %s73_s4 = scalar_lea.hbm %s1051_s1, %s576_s26  ;;  %s877_s5 = smov [#allocation2 + $0x3]  }
  0x51   :  { %s83_s6 = sshll.u32 %s877_s5, 4  ;;  %s975_s7 = sld [smem:[#allocation5 + $0x4]]  ;;  %s84_s6 = int_to_ptr.vmem [resolvable:$true] %s83_s6 }
  0x52   :  { %s711_s9 = scalar_lea.hbm %s73_s4, 16  ;;  %p714_p12 = scmp.lt.u32.totalorder %s73_s4, %s1051_s1 }
  0x53   :  { %p712_p11 = scmp.ne.s32.totalorder %s73_s4, %s711_s9  ;;  %p715_p13 = scmp.lt.u32.totalorder %s929_s8, %s711_s9 }
  0x54   :  { %p717_p1 = scmp.lt.u32.totalorder %s711_s9, %s73_s4 }
  0x55   :  { %p716_p0 = por %p715_p13, %p714_p12 }
  0x57   :  { %p718_p2 = por %p717_p1, %p716_p0 }
  0x59   :  { %p719_p3 = pnand %p718_p2, %p712_p11 }
  0x5b   :  { %722 = shalt.err (!%p719_p3)  }
  0x5c   :  { %s723_s0 = scalar_lea.vmem %s84_s6, 16  ;;  %p728_p5 = scmp.lt.s32.totalorder %s84_s6, %s912_s21 }
  0x5d   :  { %p724_p4 = scmp.ne.s32.totalorder %s84_s6, %s723_s0  ;;  %p729_p6 = scmp.lt.s32.totalorder %s938_s12, %s723_s0 }
  0x5f   :  { %p730_p7 = por %p729_p6, %p728_p5 }
  0x61   :  { %p731_p8 = pnand %p730_p7, %p724_p4 }
  0x63   :  { %734 = shalt.err (!%p731_p8)  }
  0x64   :  { %86 = dma.hbm_to_vmem [thread:$0]  %s73_s4, 16, %s84_s6, [#allocation3 + $0x3] }
  0x65   :  { %s878_s13 = smov [#allocation2 + $0x4]   ;;  %s983_s15 = sld [smem:[#allocation5 + $0x5]] }
  0x66   :  { %s99_s14 = sshll.u32 %s878_s13, 4  ;;  %s879_s16 = smov [#allocation2 + $0x5]   ;;  %s100_s14 = int_to_ptr.vmem [resolvable:$true] %s99_s14 }
  0x67   :  { %s115_s17 = sshll.u32 %s879_s16, 4  ;;  %s985_s18 = sld [smem:[#allocation5 + $0x6]]  ;;  %s988_s17 = int_to_ptr.vmem [resolvable:$true] %s115_s17 }
  0x68   :  { %s578_s19 = sshll.u32 %s975_s7, 4 }
  0x69   :  { %s89_s23 = scalar_lea.hbm %s1051_s1, %s578_s19 }
  0x6a   :  { %s735_s25 = scalar_lea.hbm %s89_s23, 16  ;;  %p738_p10 = scmp.lt.u32.totalorder %s89_s23, %s1051_s1 }
  0x6b   :  { %p736_p9 = scmp.ne.s32.totalorder %s89_s23, %s735_s25  ;;  %p739_p11 = scmp.lt.u32.totalorder %s929_s8, %s735_s25 }
  0x6c   :  { %p741_p13 = scmp.lt.u32.totalorder %s735_s25, %s89_s23 }
  0x6d   :  { %p740_p12 = por %p739_p11, %p738_p10 }
  0x6f   :  { %p742_p0 = por %p741_p13, %p740_p12 }
  0x71   :  { %p743_p1 = pnand %p742_p0, %p736_p9 }
  0x73   :  { %746 = shalt.err (!%p743_p1)  }
  0x74   :  { %s747_s29 = scalar_lea.vmem %s100_s14, 16  ;;  %p752_p3 = scmp.lt.s32.totalorder %s100_s14, %s912_s21 }
  0x75   :  { %p748_p2 = scmp.ne.s32.totalorder %s100_s14, %s747_s29  ;;  %p753_p4 = scmp.lt.s32.totalorder %s938_s12, %s747_s29 }
  0x77   :  { %p754_p5 = por %p753_p4, %p752_p3 }
  0x79   :  { %p755_p6 = pnand %p754_p5, %p748_p2 }
  0x7b   :  { %758 = shalt.err (!%p755_p6)  }
  0x7c   :  { %102 = dma.hbm_to_vmem [thread:$0]  %s89_s23, 16, %s100_s14, [#allocation3 + $0x4] }
  0x7d   :  { %s580_s30 = sshll.u32 %s983_s15, 4  ;;  %s880_s24 = smov [#allocation2 + $0x6]  }
  0x7e   :  { %s131_s27 = sshll.u32 %s880_s24, 4  ;;  %s105_s5 = scalar_lea.hbm %s1051_s1, %s580_s30  ;;  %s1003_s27 = int_to_ptr.vmem [resolvable:$true] %s131_s27 }
  0x7f   :  { %s759_s6 = scalar_lea.hbm %s105_s5, 16  ;;  %p762_p8 = scmp.lt.u32.totalorder %s105_s5, %s1051_s1 }
  0x80   :  { %p760_p7 = scmp.ne.s32.totalorder %s105_s5, %s759_s6  ;;  %p763_p9 = scmp.lt.u32.totalorder %s929_s8, %s759_s6 }
  0x81   :  { %p765_p11 = scmp.lt.u32.totalorder %s759_s6, %s105_s5 }
  0x82   :  { %p764_p10 = por %p763_p9, %p762_p8 }
  0x84   :  { %p766_p12 = por %p765_p11, %p764_p10 }
  0x86   :  { %p767_p13 = pnand %p766_p12, %p760_p7 }
  0x88   :  { %770 = shalt.err (!%p767_p13)  }
  0x89   :  { %s771_s10 = scalar_lea.vmem %s988_s17, 16  ;;  %p776_p1 = scmp.lt.s32.totalorder %s988_s17, %s912_s21 }
  0x8a   :  { %p772_p0 = scmp.ne.s32.totalorder %s988_s17, %s771_s10  ;;  %p777_p2 = scmp.lt.s32.totalorder %s938_s12, %s771_s10 }
  0x8c   :  { %p778_p3 = por %p777_p2, %p776_p1 }
  0x8e   :  { %p779_p4 = pnand %p778_p3, %p772_p0 }
  0x90   :  { %782 = shalt.err (!%p779_p4)  }
  0x91   :  { %118 = dma.hbm_to_vmem [thread:$0]  %s105_s5, 16, %s988_s17, [#allocation3 + $0x5] }
  0x92   :  { %s582_s11 = sshll.u32 %s985_s18, 4  ;;  %s583_s0 = sld [smem:[#allocation5 + $0x7]] }
  0x93   :  { %s121_s15 = scalar_lea.hbm %s1051_s1, %s582_s11 }
  0x94   :  { %s783_s16 = scalar_lea.hbm %s121_s15, 16  ;;  %p786_p6 = scmp.lt.u32.totalorder %s121_s15, %s1051_s1 }
  0x95   :  { %p784_p5 = scmp.ne.s32.totalorder %s121_s15, %s783_s16  ;;  %p787_p7 = scmp.lt.u32.totalorder %s929_s8, %s783_s16 }
  0x96   :  { %p789_p9 = scmp.lt.u32.totalorder %s783_s16, %s121_s15 }
  0x97   :  { %p788_p8 = por %p787_p7, %p786_p6 }
  0x99   :  { %p790_p10 = por %p789_p9, %p788_p8 }
  0x9b   :  { %p791_p11 = pnand %p790_p10, %p784_p5 }
  0x9d   :  { %794 = shalt.err (!%p791_p11)  }
  0x9e   :  { %s795_s17 = scalar_lea.vmem %s1003_s27, 16  ;;  %p800_p13 = scmp.lt.s32.totalorder %s1003_s27, %s912_s21 }
  0x9f   :  { %p796_p12 = scmp.ne.s32.totalorder %s1003_s27, %s795_s17  ;;  %p801_p0 = scmp.lt.s32.totalorder %s938_s12, %s795_s17 }
  0xa1   :  { %p802_p1 = por %p801_p0, %p800_p13 }
  0xa3   :  { %p803_p2 = pnand %p802_p1, %p796_p12 }
  0xa5   :  { %806 = shalt.err (!%p803_p2)  }
  0xa6   :  { %134 = dma.hbm_to_vmem [thread:$0]  %s121_s15, 16, %s1003_s27, [#allocation3 + $0x6] }
  0xa7   :  { %s881_s18 = smov [#allocation2 + $0x7]   ;;  %s584_s23 = sshll.u32 %s583_s0, 4 }
  0xa8   :  { %s147_s22 = sshll.u32 %s881_s18, 4  ;;  %s137_s28 = scalar_lea.hbm %s1051_s1, %s584_s23  ;;  %s148_s22 = int_to_ptr.vmem [resolvable:$true] %s147_s22 }
  0xa9   :  { %s807_s29 = scalar_lea.hbm %s137_s28, 16  ;;  %p810_p4 = scmp.lt.u32.totalorder %s137_s28, %s1051_s1 }
  0xaa   :  { %p808_p3 = scmp.ne.s32.totalorder %s137_s28, %s807_s29  ;;  %p811_p5 = scmp.lt.u32.totalorder %s929_s8, %s807_s29 }
  0xab   :  { %p813_p7 = scmp.lt.u32.totalorder %s807_s29, %s137_s28 }
  0xac   :  { %p812_p6 = por %p811_p5, %p810_p4 }
  0xae   :  { %p814_p8 = por %p813_p7, %p812_p6 }
  0xb0   :  { %p815_p9 = pnand %p814_p8, %p808_p3 }
  0xb2   :  { %818 = shalt.err (!%p815_p9)  }
  0xb3   :  { %s819_s27 = scalar_lea.vmem %s148_s22, 16  ;;  %p824_p11 = scmp.lt.s32.totalorder %s148_s22, %s912_s21 }
  0xb4   :  { %p820_p10 = scmp.ne.s32.totalorder %s148_s22, %s819_s27  ;;  %p825_p12 = scmp.lt.s32.totalorder %s938_s12, %s819_s27 }
  0xb6   :  { %p826_p13 = por %p825_p12, %p824_p11 }
  0xb8   :  { %p827_p0 = pnand %p826_p13, %p820_p10 }
  0xba   :  { %830 = shalt.err (!%p827_p0)  }
  0xbb   :  { %150 = dma.hbm_to_vmem [thread:$0]  %s137_s28, 16, %s148_s22, [#allocation3 + $0x7] }
  0xbc   :  { %855 = dma.done.wait [#allocation3], 16 }
  0xbd   :  { %856 = vsyncadd [#allocation3], 4294967280 }
  0xbe   :  { %857 = dma.done.wait [#allocation3 + $0x1], 16 }
  0xbf   :  { %858 = vsyncadd [#allocation3 + $0x1], 4294967280 }
  0xc0   :  { %859 = dma.done.wait [#allocation3 + $0x2], 16 }
  0xc1   :  { %860 = vsyncadd [#allocation3 + $0x2], 4294967280 }
  0xc2   :  { %861 = dma.done.wait [#allocation3 + $0x3], 16 }
  0xc3   :  { %862 = vsyncadd [#allocation3 + $0x3], 4294967280 }
  0xc4   :  { %863 = dma.done.wait [#allocation3 + $0x4], 16 }
  0xc5   :  { %864 = vsyncadd [#allocation3 + $0x4], 4294967280 }
  0xc6   :  { %865 = dma.done.wait [#allocation3 + $0x5], 16 }
  0xc7   :  { %866 = vsyncadd [#allocation3 + $0x5], 4294967280 }
  0xc8   :  { %867 = dma.done.wait [#allocation3 + $0x6], 16 }
  0xc9   :  { %868 = vsyncadd [#allocation3 + $0x6], 4294967280 }
  0xca   :  { %869 = dma.done.wait [#allocation3 + $0x7], 16 }
  0xcb   :  { %870 = vsyncadd [#allocation3 + $0x7], 4294967280  ;;  %v334_v0 = vld [vmem:[#allocation2] sm:$0xff]  ;;  %s882_s1 = smov [#allocation6]  }
  0xcc   :  { %v335_v1 = vmul.f32 %v334_v0, %v334_v0  ;;  %s348_s21 = sshll.u32 %s882_s1, 4  ;;  %s349_s21 = int_to_ptr.vmem [resolvable:$true] %s348_s21 }
  0xcd   :  { %s831_s8 = scalar_lea.vmem %s349_s21, 128  ;;  %p836_p2 = scmp.lt.s32.totalorder %s349_s21, %s349_s21 }
  0xce   :  { %336 = vadd.xlane.f32.xlu0 %v335_v1  ;;  %p832_p1 = scmp.ne.s32.totalorder %s349_s21, %s831_s8  ;;  %p837_p3 = scmp.lt.s32.totalorder %s831_s8, %s831_s8 }
  0xd0   :  { %p838_p4 = por %p837_p3, %p836_p2 }
  0xd2   :  { %p839_p5 = pnand %p838_p4, %p832_p1 }
 0x15b   :  { %v337_v2 = vpop.xlane.xlu0 %336 }
 0x15c   :  { %v338_v3 = vmax.f32 %v337_v2, 1e-24 }
 0x15e   :  { %627 = vrsqrt.f32 %v338_v3 }
 0x168   :  { %v628_v4 = vpop.eup %627 }
 0x169   :  { %v340_v5 = vmul.f32 %v628_v4, %v334_v0 }
 0x16b   :  { %341 = vst [vmem:[#allocation6] sm:$0xff] %v340_v5 }
 0x16c   :  { %842 = shalt.err (!%p839_p5)
}
 0x16d   :  { %s843_s4 = scalar_lea.hbm %s1052_s2, 128 }
 0x16e   :  { %p844_p6 = scmp.ne.s32.totalorder %s1052_s2, %s843_s4  ;;  %p847_p7 = scmp.lt.u32.totalorder %s843_s4, %s1052_s2 }
 0x170   :  { %p849_p8 = pnand %p847_p7, %p844_p6 }
 0x172   :  { %852 = shalt.err (!%p849_p8)
}
 0x173   :  { %351 = dma.vmem_to_hbm [thread:$0]  %s349_s21, 128, %s1052_s2, [#allocation7]  }
 0x174   :  { %871 = dma.done.wait [#allocation7], 128  }
 0x175   :  { %872 = vsyncadd [#allocation7], 4294967168 }
 0x176   :  { %355 = vsyncpa [#allocation7], 1 }
 0x177   :  { %356 = vsyncmov [#allocation3] }
 0x17a   :  { %s357_s0 = vpop.sfrf %356 }
 0x17b   :  { %p601_p9 = scmp.ne.s32.totalorder %s357_s0, 0 }
 0x17d   :  { %361 = shalt.err (%p601_p9)  }
 0x17e   :  { %363 = vsyncmov [#allocation3 + $0x1] }
 0x181   :  { %s364_s13 = vpop.sfrf %363 }
 0x182   :  { %p602_p10 = scmp.ne.s32.totalorder %s364_s13, 0 }
 0x184   :  { %368 = shalt.err (%p602_p10)  }
 0x185   :  { %370 = vsyncmov [#allocation3 + $0x2] }
 0x188   :  { %s371_s14 = vpop.sfrf %370 }
 0x189   :  { %p603_p11 = scmp.ne.s32.totalorder %s371_s14, 0 }
 0x18b   :  { %375 = shalt.err (%p603_p11)  }
 0x18c   :  { %377 = vsyncmov [#allocation3 + $0x3] }
 0x18f   :  { %s378_s15 = vpop.sfrf %377 }
 0x190   :  { %p604_p12 = scmp.ne.s32.totalorder %s378_s15, 0 }
 0x192   :  { %382 = shalt.err (%p604_p12)  }
 0x193   :  { %384 = vsyncmov [#allocation3 + $0x4] }
 0x196   :  { %s385_s2 = vpop.sfrf %384 }
 0x197   :  { %p605_p13 = scmp.ne.s32.totalorder %s385_s2, 0 }
 0x199   :  { %389 = shalt.err (%p605_p13)  }
 0x19a   :  { %391 = vsyncmov [#allocation3 + $0x5] }
 0x19d   :  { %s392_s16 = vpop.sfrf %391 }
 0x19e   :  { %p606_p0 = scmp.ne.s32.totalorder %s392_s16, 0 }
 0x1a0   :  { %396 = shalt.err (%p606_p0)  }
 0x1a1   :  { %398 = vsyncmov [#allocation3 + $0x6] }
 0x1a4   :  { %s399_s19 = vpop.sfrf %398 }
 0x1a5   :  { %p607_p1 = scmp.ne.s32.totalorder %s399_s19, 0 }
 0x1a7   :  { %403 = shalt.err (%p607_p1)  }
 0x1a8   :  { %405 = vsyncmov [#allocation3 + $0x7] }
 0x1ab   :  { %s406_s20 = vpop.sfrf %405 }
 0x1ac   :  { %p608_p2 = scmp.ne.s32.totalorder %s406_s20, 0 }
 0x1ae   :  { %410 = shalt.err (%p608_p2)  }
 0x1af   :  { %412 = vsyncmov [#allocation3 + $0x8] }
 0x1b2   :  { %s413_s17 = vpop.sfrf %412 }
 0x1b3   :  { %p609_p3 = scmp.ne.s32.totalorder %s413_s17, 0 }
 0x1b5   :  { %417 = shalt.err (%p609_p3)  }
 0x1b6   :  { %419 = vsyncmov [#allocation3 + $0x9] }
 0x1b9   :  { %s420_s18 = vpop.sfrf %419 }
 0x1ba   :  { %p610_p4 = scmp.ne.s32.totalorder %s420_s18, 0 }
 0x1bc   :  { %424 = shalt.err (%p610_p4)  }
 0x1bd   :  { %426 = vsyncmov [#allocation3 + $0xa] }
 0x1c0   :  { %s427_s22 = vpop.sfrf %426 }
 0x1c1   :  { %p611_p5 = scmp.ne.s32.totalorder %s427_s22, 0 }
 0x1c3   :  { %431 = shalt.err (%p611_p5)  }
 0x1c4   :  { %433 = vsyncmov [#allocation3 + $0xb] }
 0x1c7   :  { %s434_s23 = vpop.sfrf %433 }
 0x1c8   :  { %p612_p6 = scmp.ne.s32.totalorder %s434_s23, 0 }
 0x1ca   :  { %438 = shalt.err (%p612_p6)  }
 0x1cb   :  { %440 = vsyncmov [#allocation3 + $0xc] }
 0x1ce   :  { %s441_s25 = vpop.sfrf %440 }
 0x1cf   :  { %p613_p7 = scmp.ne.s32.totalorder %s441_s25, 0 }
 0x1d1   :  { %445 = shalt.err (%p613_p7)  }
 0x1d2   :  { %447 = vsyncmov [#allocation3 + $0xd] }
 0x1d5   :  { %s448_s26 = vpop.sfrf %447 }
 0x1d6   :  { %p614_p8 = scmp.ne.s32.totalorder %s448_s26, 0 }
 0x1d8   :  { %452 = shalt.err (%p614_p8)  }
 0x1d9   :  { %454 = vsyncmov [#allocation3 + $0xe] }
 0x1dc   :  { %s455_s28 = vpop.sfrf %454 }
 0x1dd   :  { %p615_p9 = scmp.ne.s32.totalorder %s455_s28, 0 }
 0x1df   :  { %459 = shalt.err (%p615_p9)  }
 0x1e0   :  { %461 = vsyncmov [#allocation3 + $0xf] }
 0x1e3   :  { %s462_s29 = vpop.sfrf %461 }
 0x1e4   :  { %p616_p10 = scmp.ne.s32.totalorder %s462_s29, 0 }
 0x1e6   :  { %466 = shalt.err (%p616_p10)  }

</bundles_post_ra>
